<compile_context>
chip_gen: v7x
topology: tpu7x:2x2x1
jax: 0.10.0
libtpu: 0.0.40
codegen_flags: <defaults>
</compile_context>

<pallas_src>
import jax
import jax.numpy as jnp
from jax.experimental import pallas as pl
from jax.experimental.pallas import tpu as pltpu


def _round_up(v, m):
    return ((v + m - 1) // m) * m


def _sublane(dtype):
    # Packed sublane multiple per dtype (f32: 8, bf16: 16, int8/fp8: 32).
    return {4: 8, 2: 16, 1: 32}[jnp.dtype(dtype).itemsize]


def _choose_tiles(M, D, dtype):
    """Pick (tm, tn, tk) with tk % tn == 0.

    Sized against the most VMEM-constrained generation (v7x: 64 MiB physical,
    32 MiB default scoped); the largest config (tm=tn=512, tk=1024, f32,
    double buffered) is ~11 MiB, which also fits v5e's 16 MiB default scoped
    VMEM and leaves v6e plenty of headroom.
    """
    sub = _sublane(dtype)
    if D < 128:
        # Tiny hidden (e.g. the demo D=32): full-extent blocks along D --
        # no lane padding and no wasted MXU work / DMA on padded lanes.
        tn = tk = D
        if M <= 1024:
            # Split M in two when possible so both v7x TensorCores get work.
            tm = M if M < 2 * sub else _round_up(-(-M // 2), sub)
        else:
            tm = 512
        return tm, tn, tk
    # Real transformer widths: lane-dense 256/512-wide tiles fill the 256x256
    # MXU (v6e/v7x) and keep output stores unmasked; tn=128 still fills
    # v5e's 128x128 MXUs when D isn't 256-aligned.
    tn = 512 if D % 512 == 0 else (256 if D % 256 == 0 else 128)
    tk = 2 * tn if D % (2 * tn) == 0 else tn   # fewer K grid steps
    tm = 512
    if M <= tm:
        if (D + tn - 1) // tn < 2 and M >= 2 * sub:
            tm = _round_up(-(-M // 2), sub)    # >= 2 parallel blocks for v7x
        else:
            tm = _round_up(M, sub)
    return tm, tn, tk


def residual_linear(x, w, b):
    """out = (x @ w + b) + x, fused in one tiled Pallas kernel.

    x: [batch, seq, hidden]; w: [hidden, hidden]; b: [hidden].
    bf16 inputs are fed to the MXU natively (recommended on v5e when model
    precision allows); accumulation is always f32.
    """
    B, S, D = x.shape
    M = B * S
    x2d = x.reshape(M, D)
    dtype = x.dtype
    itemsize = jnp.dtype(dtype).itemsize

    tm, tn, tk = _choose_tiles(M, D, dtype)
    r = tk // tn                      # residual column blocks per K block

    Mp = _round_up(M, tm)
    Dp = _round_up(D, tk)             # tk % tn == 0, so also a multiple of tn

    # Pad only when the shapes don't already tile evenly.  K/N padding must
    # be real zeros for correctness; M padding just adds rows sliced off.
    xp = x2d if (Mp == M and Dp == D) else jnp.pad(
        x2d, ((0, Mp - M), (0, Dp - D)))
    wp = w if Dp == D else jnp.pad(w, ((0, Dp - D), (0, Dp - D)))
    bp = (b if Dp == D else jnp.pad(b, ((0, Dp - D),))).reshape(1, Dp)

    grid_m, grid_n, grid_k = Mp // tm, Dp // tn, Dp // tk

    def kernel(x_ref, w_ref, b_ref, o_ref, acc_ref):
        # x_ref: (tm, tk) LHS tile at (i, k)   w_ref: (tk, tn) weight at (k, j)
        # b_ref: (1, tn) bias at (0, j)        o_ref / acc_ref: (tm, tn)
        j = pl.program_id(1)
        k = pl.program_id(2)

        @pl.when(k == 0)
        def _():
            # Fold the bias into the accumulator init (replaces the zeros
            # store; removes an epilogue VALU add).
            acc_ref[...] = jnp.broadcast_to(
                b_ref[...].astype(jnp.float32), acc_ref.shape)

        # MXU matmul in the inputs' native dtype, f32 accumulation.
        acc_ref[...] += jnp.dot(x_ref[...], w_ref[...],
                                preferred_element_type=jnp.float32)

        # Fused residual add pulled straight from the LHS tile: for a square
        # D->D projection the residual columns [j*tn, (j+1)*tn) live inside
        # the LHS tile with K-block index j // r at lane offset (j % r) * tn.
        # Added exactly once per output tile; no duplicate x input needed.
        if r == 1:
            @pl.when(k == j)
            def _():
                acc_ref[...] += x_ref[...].astype(jnp.float32)
        else:
            @pl.when(k == j // r)
            def _():
                off = pl.multiple_of((j % r) * tn, tn)
                acc_ref[...] += x_ref[:, pl.ds(off, tn)].astype(jnp.float32)

        @pl.when(k == grid_k - 1)
        def _():
            o_ref[...] = acc_ref[...].astype(o_ref.dtype)

    # Advisory scheduling hint; accounts for re-streaming (w is read grid_m
    # times, the LHS x strip grid_n times).
    cost = pl.CostEstimate(
        flops=2 * Mp * Dp * Dp,
        transcendentals=0,
        bytes_accessed=(Mp * Dp * grid_n + Dp * Dp * grid_m + Dp
                        + Mp * Dp) * itemsize,
    )

    out2d = pl.pallas_call(
        kernel,
        out_shape=jax.ShapeDtypeStruct((Mp, Dp), dtype),
        grid_spec=pltpu.PrefetchScalarGridSpec(
            num_scalar_prefetch=0,
            grid=(grid_m, grid_n, grid_k),
            in_specs=[
                pl.BlockSpec((tm, tk), lambda i, j, k: (i, k)),  # LHS/residual
                pl.BlockSpec((tk, tn), lambda i, j, k: (k, j)),  # weight
                pl.BlockSpec((1, tn), lambda i, j, k: (0, j)),   # bias
            ],
            out_specs=pl.BlockSpec((tm, tn), lambda i, j, k: (i, j)),
            scratch_shapes=[pltpu.VMEM((tm, tn), jnp.float32)],
        ),
        compiler_params=pltpu.CompilerParams(
            dimension_semantics=("parallel", "parallel", "arbitrary"),
            # Largest tile config uses ~11 MiB double-buffered; explicit
            # limit gives headroom over v5e's 16 MiB default scoped VMEM and
            # is well inside every generation's physical budget (v7x 64 MiB).
            vmem_limit_bytes=32 * 1024 * 1024,
        ),
        cost_estimate=cost,
    )(xp, wp, bp)

    if Mp != M or Dp != D:
        out2d = out2d[:M, :D]
    return out2d.reshape(B, S, D)


if __name__ == "__main__":
    # Small transformer-ish shapes: batch=2, seq=8, hidden=32.
    B, S, D = 2, 8, 32
    key = jax.random.PRNGKey(0)
    kx, kw, kb = jax.random.split(key, 3)

    x = jax.random.normal(kx, (B, S, D), dtype=jnp.float32)
    # Deterministic synthetic parameter init (not a checkpoint load).
    w = jax.random.normal(kw, (D, D), dtype=jnp.float32) * (1.0 / jnp.sqrt(D))
    b = jax.random.normal(kb, (D,), dtype=jnp.float32) * 0.01

    out = jax.block_until_ready(residual_linear(x, w, b))

    # Reference: Residual(Linear)(x) = x @ w + b + x.
    ref = jnp.einsum("bsd,de->bse", x, w) + b + x
    assert jnp.allclose(out, ref, atol=1e-4, rtol=1e-4), "mismatch vs reference"

    print("KERNEL_OK")
</pallas_src>

<mosaic_0001>
module attributes {stable_mosaic.version = 11 : i64} {
  func.func @kernel(%arg0: i32, %arg1: i32, %arg2: i32, %arg3: memref<8x32xf32, #tpu.memory_space<vmem>>, %arg4: memref<32x32xf32, #tpu.memory_space<vmem>>, %arg5: memref<1x32xf32, #tpu.memory_space<vmem>>, %arg6: memref<8x32xf32, #tpu.memory_space<vmem>>, %arg7: memref<8x32xf32, #tpu.memory_space<vmem>>) attributes {dimension_semantics = [#tpu.dimension_semantics<parallel>, #tpu.dimension_semantics<parallel>, #tpu.dimension_semantics<arbitrary>], iteration_bounds = array<i64: 2, 1, 1>, scalar_prefetch = 0 : i64, scratch_operands = 1 : i64, tpu.core_type = #tpu.core_type<tc>, window_params = [{transform_indices = @transform_0, window_bounds = array<i64: 8, 32>}, {transform_indices = @transform_1, window_bounds = array<i64: 32, 32>}, {transform_indices = @transform_2, window_bounds = array<i64: 1, 32>}, {transform_indices = @transform_3, window_bounds = array<i64: 8, 32>}]} {
    %c0_i32 = arith.constant 0 : i32
    %0 = arith.cmpi eq, %arg2, %c0_i32 : i32
    %1 = arith.extui %0 : i1 to i32
    %c0_i32_0 = arith.constant 0 : i32
    %2 = arith.cmpi ne, %1, %c0_i32_0 : i32
    scf.if %2 {
      %c0_11 = arith.constant 0 : index
      %c0_12 = arith.constant 0 : index
      %15 = vector.load %arg5[%c0_11, %c0_12] : memref<1x32xf32, #tpu.memory_space<vmem>>, vector<1x32xf32>
      %16 = vector.shape_cast %15 : vector<1x32xf32> to vector<1x32xf32>
      %17 = vector.broadcast %16 : vector<1x32xf32> to vector<8x32xf32>
      %c0_13 = arith.constant 0 : index
      %c0_14 = arith.constant 0 : index
      %18 = vector.load %arg7[%c0_13, %c0_14] : memref<8x32xf32, #tpu.memory_space<vmem>>, vector<8x32xf32>
      tpu.vector_store %arg7[%c0_13, %c0_14], %17 {strides = array<i32>} : memref<8x32xf32, #tpu.memory_space<vmem>>, vector<8x32xf32>,
    } else {
    }
    %c0 = arith.constant 0 : index
    %c0_1 = arith.constant 0 : index
    %3 = vector.load %arg7[%c0, %c0_1] : memref<8x32xf32, #tpu.memory_space<vmem>>, vector<8x32xf32>
    %c0_2 = arith.constant 0 : index
    %c0_3 = arith.constant 0 : index
    %4 = vector.load %arg3[%c0_2, %c0_3] : memref<8x32xf32, #tpu.memory_space<vmem>>, vector<8x32xf32>
    %c0_4 = arith.constant 0 : index
    %c0_5 = arith.constant 0 : index
    %5 = vector.load %arg4[%c0_4, %c0_5] : memref<32x32xf32, #tpu.memory_space<vmem>>, vector<32x32xf32>
    %cst = arith.constant dense<0.000000e+00> : vector<8x32xf32>
    %6 = tpu.matmul %4, %5, %cst {dimension_numbers = #tpu.dot_dimension_numbers<[1], [0], [0], [1], [0, 0, 1, 1], [], []>} : vector<8x32xf32>, vector<32x32xf32>, vector<8x32xf32> -> vector<8x32xf32>
    %7 = arith.addf %3, %6 : vector<8x32xf32>
    %c0_6 = arith.constant 0 : index
    %c0_7 = arith.constant 0 : index
    %8 = vector.load %arg7[%c0_6, %c0_7] : memref<8x32xf32, #tpu.memory_space<vmem>>, vector<8x32xf32>
    tpu.vector_store %arg7[%c0_6, %c0_7], %7 {strides = array<i32>} : memref<8x32xf32, #tpu.memory_space<vmem>>, vector<8x32xf32>,
    %9 = arith.cmpi eq, %arg2, %arg1 : i32
    %10 = arith.extui %9 : i1 to i32
    %c0_i32_8 = arith.constant 0 : i32
    %11 = arith.cmpi ne, %10, %c0_i32_8 : i32
    scf.if %11 {
      %c0_11 = arith.constant 0 : index
      %c0_12 = arith.constant 0 : index
      %15 = vector.load %arg7[%c0_11, %c0_12] : memref<8x32xf32, #tpu.memory_space<vmem>>, vector<8x32xf32>
      %c0_13 = arith.constant 0 : index
      %c0_14 = arith.constant 0 : index
      %16 = vector.load %arg3[%c0_13, %c0_14] : memref<8x32xf32, #tpu.memory_space<vmem>>, vector<8x32xf32>
      %17 = arith.addf %15, %16 : vector<8x32xf32>
      %c0_15 = arith.constant 0 : index
      %c0_16 = arith.constant 0 : index
      %18 = vector.load %arg7[%c0_15, %c0_16] : memref<8x32xf32, #tpu.memory_space<vmem>>, vector<8x32xf32>
      tpu.vector_store %arg7[%c0_15, %c0_16], %17 {strides = array<i32>} : memref<8x32xf32, #tpu.memory_space<vmem>>, vector<8x32xf32>,
    } else {
    }
    %c0_i32_9 = arith.constant 0 : i32
    %12 = arith.cmpi eq, %arg2, %c0_i32_9 : i32
    %13 = arith.extui %12 : i1 to i32
    %c0_i32_10 = arith.constant 0 : i32
    %14 = arith.cmpi ne, %13, %c0_i32_10 : i32
    scf.if %14 {
      %c0_11 = arith.constant 0 : index
      %c0_12 = arith.constant 0 : index
      %15 = vector.load %arg7[%c0_11, %c0_12] : memref<8x32xf32, #tpu.memory_space<vmem>>, vector<8x32xf32>
      %c0_13 = arith.constant 0 : index
      %c0_14 = arith.constant 0 : index
      %16 = vector.load %arg6[%c0_13, %c0_14] : memref<8x32xf32, #tpu.memory_space<vmem>>, vector<8x32xf32>
      tpu.vector_store %arg6[%c0_13, %c0_14], %15 {strides = array<i32>} : memref<8x32xf32, #tpu.memory_space<vmem>>, vector<8x32xf32>,
    } else {
    }
    return
  }
  func.func @transform_0(%arg0: i32, %arg1: i32, %arg2: i32) -> (i32, i32) {
    %c0_i32 = arith.constant 0 : i32
    return %arg0, %arg2 : i32, i32
  }
  func.func @transform_1(%arg0: i32, %arg1: i32, %arg2: i32) -> (i32, i32) {
    %c0_i32 = arith.constant 0 : i32
    return %arg2, %arg1 : i32, i32
  }
  func.func @transform_2(%arg0: i32, %arg1: i32, %arg2: i32) -> (i32, i32) {
    %c0_i32 = arith.constant 0 : i32
    %c0_i32_0 = arith.constant 0 : i32
    return %c0_i32, %arg1 : i32, i32
  }
  func.func @transform_3(%arg0: i32, %arg1: i32, %arg2: i32) -> (i32, i32) {
    %c0_i32 = arith.constant 0 : i32
    return %arg0, %arg1 : i32, i32
  }
}

</mosaic_0001>

<bundles_post_ra>
// kernel: tpu_custom_call.1
= control target key start
LH: loop header
LB: loop body
LE: loop exit
PB: predicated region body
PF: predicated region fallthrough
CT: control target
= control target key end

     0   :  { %8 = vsyncpa [#allocation4], 0  ;;  %s1001_s0 = inlined_call_operand.hbm [shape: f32[16,32], index: 0, kind: input, shape index: {}]   ;;  %s1002_s1 = inlined_call_operand.hbm [shape: f32[32,32], index: 1, kind: input, shape index: {}]   ;;  %s1003_s2 = inlined_call_operand.vmem [shape: f32[1,32], index: 2, kind: input, shape index: {}]   ;;  %s1004_s3 = inlined_call_operand.hbm [shape: f32[16,32], index: 3, kind: output, shape index: {}]  }
   0x1   :  { %10 = vsyncpa [#allocation4 + $0x1], 0 }
   0x2   :  { %11 = vsyncpa [#allocation7], 0 }
   0x3   :  { %12 = vsyncpa [#allocation5], 0 }
   0x4   :  { %14 = vsyncpa [#allocation5 + $0x1], 0  ;;  %s775_s12 = smov 0   ;;  %s777_s13 = smov 0  }
   0x5   :  { %s779_s14 = smov 0   ;;  %s781_s15 = smov 0  }
   0x6   :  { %s783_s16 = smov 0   ;;  %s785_s17 = smov 0  }
   0x7 LB: > { %s483_s18 = sadd.s32 4294967295, %s745_s17   ;;  %s484_s19 = sadd.s32 4294967294, %s745_s17   ;;  %s745_s17 = sphi %s785_s17, %s20_s17   ;;  %s741_s16 = sphi %s783_s16, %s1028_s16   ;;  %s737_s15 = sphi %s781_s15, %s1027_s15   ;;  %s733_s14 = sphi %s779_s14, %s1026_s14   ;;  %s729_s13 = sphi %s777_s13, %s1025_s13   ;;  %s725_s12 = sphi %s775_s12, %s1024_s12  }
   0x8   : > { %p61_p0 = scmp.ne.s32.totalorder %s729_s13, %s725_s12  ;;  %p809_p1 = scmp.eq.s32.totalorder %s483_s18, 0 }
   0x9   : > { %p813_p2 = scmp.eq.s32.totalorder %s483_s18, 1  ;;  %p147_p3 = scmp.eq.s32.totalorder %s484_s19, 1 }
   0xa   : > { %s1009_s20 = scalar_select %p809_p1, 1, 0 }
   0xb   : > { %s1010_s21 = scalar_select %p813_p2, 1, 0 }
   0xc   : > { %p819_p4 = por %p809_p1, %p61_p0  ;;  %p485_p5 = scmp.ge.s32.totalorder %s745_s17, 1 }
   0xd   : > { %p824_p6 = por %p147_p3, %p61_p0  ;;  %p154_p7 = scmp.lt.s32.totalorder %s745_s17, 3 }
   0xe   : > { %s1011_s22 = scalar_select %p819_p4, 1, 0 }
   0xf   : > { %s1012_s23 = scalar_select %p824_p6, 1, 0 }
  0x10   : > { %p829_p8 = pnand %p485_p5, %p154_p7  ;;  %s747_s25 = smov [#allocation6]  }
  0x11   : > { %s170_s26 = sshll.u32 %s747_s25, 4  ;;  %s39_s28 = sadd.s32 1, %s741_s16  ;;  %s171_s26 = int_to_ptr.vmem [resolvable:$true] %s170_s26 }
  0x12   : > { %s1013_s24 = scalar_select %p829_p8, 1, 0 }
  0x13   : > { %p531_p9 = pneg %p829_p8  ;;  %s601_s4 = scalar_lea.hbm %s1002_s1, 512 }
  0x14   : > { %p602_p12 = scmp.ne.s32.totalorder %s1002_s1, %s601_s4  ;;  %p608_p5 = scmp.lt.u32.totalorder %s601_s4, %s1002_s1 }
  0x15   : > { %p838_p11 = pnand %p531_p9, %p809_p1 }
  0x17   : > { %p603_p13 = pneg %p838_p11 }
  0x19   : > { %p604_p0 = pnand %p603_p13, %p602_p12 }
  0x1b   : > { %p605_p3 = pneg %p604_p0 }
  0x1d   : > { %p610_p7 = pnand %p608_p5, %p605_p3 }
  0x1f   : > { %613 = shalt.err (!%p610_p7)
}
  0x20   : > { %s614_s9 = scalar_lea.vmem %s171_s26, 512  ;;  %p622_p1 = scmp.lt.s32.totalorder %s171_s26, %s171_s26 }
  0x21   : > { %p615_p9 = scmp.ne.s32.totalorder %s171_s26, %s614_s9  ;;  %p623_p4 = scmp.lt.s32.totalorder %s614_s9, %s614_s9 }
  0x23   : > { %p617_p10 = pnand %p615_p9, %p603_p13  ;;  %p624_p8 = por %p623_p4, %p622_p1 }
  0x25   : > { %p618_p6 = pneg %p617_p10 }
  0x27   : > { %p625_p2 = pnand %p624_p8, %p618_p6 }
  0x29   : > { %628 = shalt.err (!%p625_p2)
}
  0x2a   : > { %s748_s10 = smov 128   ;;  %s749_s11 = smov 8  }
  0x2b   : > { %534 = dma.hbm_to_vmem [thread:$0]  (!%p838_p11), %s1002_s1, 512, %s171_s26, [#allocation7], %s748_s10, %s748_s10, %s749_s11  }
  0x2c   : > { %p41_p1 = scmp.ge.s32.totalorder %s39_s28, 2  ;;  %s48_s25 = sadd.s32 1, %s733_s14 }
  0x2d   : > { %p55_p2 = scmp.ne.s32.totalorder %s733_s14, %s729_s13  ;;  %p56_p4 = scmp.eq.s32.totalorder %s745_s17, 0 }
  0x2e   : > { %s1030_s28 = smov (%p41_p1, %s39_s28), 0  ;;  %p1016_p8 = scmp.ne.s32.totalorder %s1010_s21, 0 }
  0x2f   : > { %p865_p6 = por %p56_p4, %p55_p2  ;;  %s43_s27 = ssub.s32 %s741_s16, %s1030_s28 }
  0x30   : > { %p871_p10 = por %p1016_p8, %p55_p2  ;;  %p544_p12 = scmp.lt.s32.totalorder %s745_s17, 2 }
  0x31   : > { %p46_p11 = scmp.eq.s32.totalorder %s43_s27, 0  ;;  %s190_s26 = sand.u32 1, %s733_s14  }
  0x32   : > { %s489_s4 = sshll.u32 %s190_s26, 3  ;;  %s490_s6 = sshll.u32 %s741_s16, 7 }
  0x33   : > { %s880_s5 = scalar_select %p46_p11, %s733_s14, %s48_s25  }
  0x34   : > { %s886_s9 = scalar_lea.hbm %s1001_s0, %s490_s6  ;;  %s194_s21 = scalar_lea.vmem [#allocation3], %s489_s4 }
  0x35   : > { %s202_s10 = sshll.u32 %s194_s21, 4  ;;  %p892_p13 = pnand %p544_p12, %p865_p6  ;;  %s888_s10 = int_to_ptr.vmem [resolvable:$true] %s202_s10 }
  0x36   : > { %s191_s18 = scalar_lea.sflag [#allocation4], %s190_s26  ;;  %s629_s19 = scalar_lea.hbm %s886_s9, 128 }
  0x37   : > { %p630_p0 = scmp.ne.s32.totalorder %s886_s9, %s629_s19  ;;  %p631_p3 = pneg %p892_p13 }
  0x38   : > { %s634_s4 = scalar_lea.hbm %s1001_s0, 256  ;;  %p635_p9 = scmp.lt.u32.totalorder %s886_s9, %s1001_s0 }
  0x39   : > { %p632_p5 = pnand %p631_p3, %p630_p0  ;;  %p636_p1 = scmp.lt.u32.totalorder %s634_s4, %s629_s19 }
  0x3a   : > { %p638_p4 = scmp.lt.u32.totalorder %s629_s19, %s886_s9 }
  0x3b   : > { %p633_p7 = pneg %p632_p5  ;;  %p637_p2 = por %p636_p1, %p635_p9 }
  0x3d   : > { %p639_p6 = por %p638_p4, %p637_p2 }
  0x3f   : > { %p640_p8 = pnand %p639_p6, %p633_p7 }
  0x41   : > { %643 = shalt.err (!%p640_p8)
}
  0x42   : > { %s644_s26 = scalar_lea.vmem %s888_s10, 128  ;;  %s750_s7 = smov [#allocation3]  }
  0x43   : > { %p645_p12 = scmp.ne.s32.totalorder %s888_s10, %s644_s26  ;;  %s649_s8 = sshll.u32 %s750_s7, 4  ;;  %s650_s8 = int_to_ptr.vmem [resolvable:$false] %s649_s8 }
  0x44   : > { %s651_s21 = scalar_lea.vmem %s650_s8, 256  ;;  %p652_p5 = scmp.lt.s32.totalorder %s888_s10, %s650_s8 }
  0x45   : > { %p647_p11 = pnand %p645_p12, %p631_p3  ;;  %p653_p9 = scmp.lt.s32.totalorder %s651_s21, %s644_s26 }
  0x47   : > { %p648_p0 = pneg %p647_p11  ;;  %p654_p1 = por %p653_p9, %p652_p5 }
  0x49   : > { %p655_p2 = pnand %p654_p1, %p648_p0 }
  0x4b   : > { %658 = shalt.err (!%p655_p2)
}
  0x4c   : > { %538 = dma.hbm_to_vmem [thread:$0]  (!%p892_p13), %s886_s9, 128, %s888_s10, %s191_s18  }
  0x4d   : > { %p1019_p7 = scmp.ne.s32.totalorder %s1013_s24, 0 }
  0x4e   : > { %s924_s19 = sand.u32 (!%p1019_p7), 1, %s729_s13   ;;  %p1020_p3 = scmp.ne.s32.totalorder (!%p1019_p7), %s1011_s22, 0 }
  0x4f   : > { %211 = sbr.rel (%p1019_p7) target bundleno = 347 (0x15b), region = 32  ;;  %s492_s25 = sshll.u32 (!%p1019_p7), %s924_s19, 3 }
  0x50   : > { %s214_s27 = scalar_lea.sflag (!%p1019_p7), [#allocation4], %s924_s19  ;;  %s217_s4 = scalar_lea.vmem (!%p1019_p7), [#allocation3], %s492_s25 }
  0x56   : > { %712 = dma.done.wait (%p1020_p3), %s214_s27, 128  }
  0x57   : > { %714 = vsyncadd (%p1020_p3), %s214_s27, 4294967168  ;;  %p1021_p13 = scmp.ne.s32.totalorder %s1009_s20, 0 }
  0x59   : > { %716 = dma.done.wait (%p1021_p13), [#allocation7], 512  }
  0x5a   : > { %718 = vsyncadd (%p1021_p13), [#allocation7], 4294966784  ;;  %v751_v0 = vmov 0.0|0.0   ;;  %vm752_vm0 = vmmov 0   ;;  %v753_v1 = vmov 0.0   ;;  %v266_v2 = vld [vmem:[#allocation6] sm:$0xff] }
  0x5b   : > { %517 = vmatprep.subr.bf16.mxu0 %v751_v0  ;;  %514 = vmatprep.mubr.msk.f32.mxu0 %vm752_vm0, %v753_v1  ;;  %v267_v3 = vld [vmem:[#allocation6 + $0x8] sm:$0xff]  ;;  %v268_v4 = vld [vmem:[#allocation6 + $0x10] sm:$0xff]  ;;  %v269_v6 = vld [vmem:[#allocation6 + $0x18] sm:$0xff]  ;;  %vm262_vm1 = vcmask 261120   ;;  %s498_s20 = sshll.u32 %s737_s15, 7  ;;  %s246_s22 = scalar_lea.vmem [#allocation8], %s492_s25 }
  0x5c   : > { %v518_v5 = vpack.c.bf16 %v267_v3, %v266_v2  ;;  %v495_v7 = vld [vmem:[%s1003_s2] ss:$0 sm:$0xff]  ;;  %v521_v8 = vpack.c.bf16 %v269_v6, %v268_v4  ;;  %v265_v9 = vld [vmem:[%s217_s4] sm:$0xff]  ;;  %s374_s10 = sshll.u32 %s246_s22, 4  ;;  %s951_s29 = scalar_lea.hbm %s1004_s3, %s498_s20  ;;  %s953_s10 = int_to_ptr.vmem [resolvable:$true] %s374_s10 }
  0x5d   : > { %263 = vst.msk [vmem:[#allocation2] sm:$0xff] %vm262_vm1, %v495_v7  ;;  %s360_s6 = scalar_lea.sflag [#allocation5], %s924_s19  ;;  %s659_s26 = scalar_lea.vmem %s953_s10, 128 }
  0x5e   : > { %519 = vmatpush3.bf16.msra.mxu0 %v518_v5  ;;  %p660_p4 = scmp.ne.s32.totalorder %s953_s10, %s659_s26  ;;  %s754_s15 = smov [#allocation8]  }
  0x5f   : > { %520 = vmatprep.subr.bf16.mxu0 %v751_v0  ;;  %s663_s7 = sshll.u32 %s754_s15, 4  ;;  %s664_s7 = int_to_ptr.vmem [resolvable:$false] %s663_s7 }
  0x60   : > { %p661_p6 = pnand %p660_p4, %p871_p10  ;;  %s665_s8 = scalar_lea.vmem %s664_s7, 256 }
  0x61   : > { %p666_p12 = scmp.lt.s32.totalorder %s953_s10, %s664_s7  ;;  %p667_p11 = scmp.lt.s32.totalorder %s665_s8, %s659_s26 }
  0x62   : > { %522 = vmatpush3.bf16.msra.mxu0 %v521_v8  ;;  %p662_p8 = pneg %p661_p6 }
  0x63   : > { %p668_p0 = por %p667_p11, %p666_p12 }
  0x64   : > { %v264_v10 = vld [vmem:[#allocation2] sm:$0xff] }
  0x65   : > { %515 = vmatmul.mubr.msk.f32.vlgmr.msra.gmra.mrb[0].mxu0 %vm262_vm1, %v265_v9  ;;  %p669_p5 = pnand %p668_p0, %p662_p8 }
 0x138   : > { %v340_v11 = vpop.f32.mrb[0].mxu0 }
 0x139   : > { %v344_v12 = vadd.f32 %v340_v11, %v264_v10  ;;  %v516_v13 = vpop.f32.mrb[1].mxu0 }
 0x13b   : > { %345 = vst.msk [vmem:[#allocation2] sm:$0xff] %vm262_vm1, %v344_v12 }
 0x142   : > { %v350_v14 = vld [vmem:[#allocation2] sm:$0xff] }
 0x143   : > { %v352_v15 = vadd.f32 %v350_v14, %v265_v9 }
 0x145   : > { %353 = vst.msk [vmem:[#allocation2] sm:$0xff] %vm262_vm1, %v352_v15 }
 0x14c   : > { %v357_v16 = vld [vmem:[#allocation2] sm:$0xff] }
 0x14d   : > { %358 = vst.msk [vmem:[%s246_s22] sm:$0xff] %vm262_vm1, %v357_v16 }
 0x14e   : > { %672 = shalt.err (!%p669_p5)
}
 0x14f   : > { %s673_s21 = scalar_lea.hbm %s951_s29, 128  ;;  %s677_s27 = scalar_lea.hbm %s1004_s3, 256 }
 0x150   : > { %p674_p9 = scmp.ne.s32.totalorder %s951_s29, %s673_s21  ;;  %p678_p7 = scmp.lt.u32.totalorder %s951_s29, %s1004_s3 }
 0x151   : > { %p679_p3 = scmp.lt.u32.totalorder %s677_s27, %s673_s21  ;;  %p681_p4 = scmp.lt.u32.totalorder %s673_s21, %s951_s29 }
 0x152   : > { %p675_p1 = pnand %p674_p9, %p871_p10 }
 0x153   : > { %p680_p13 = por %p679_p3, %p678_p7 }
 0x154   : > { %p676_p2 = pneg %p675_p1 }
 0x155   : > { %p682_p6 = por %p681_p4, %p680_p13 }
 0x157   : > { %p683_p8 = pnand %p682_p6, %p676_p2 }
 0x159   : > { %686 = shalt.err (!%p683_p8)
}
 0x15a   : > { %529 = dma.vmem_to_hbm [thread:$0]  (%p871_p10), %s953_s10, 128, %s951_s29, %s360_s6  }
 0x15b PF: > { %s386_s9 = sand.u32 1, %s725_s12   ;;  %p1022_p12 = scmp.ne.s32.totalorder %s1012_s23, 0 }
 0x15c   : > { %p1023_p11 = scmp.ge.s32.totalorder %s745_s17, 2  ;;  %s387_s20 = scalar_lea.sflag [#allocation5], %s386_s9 }
 0x15e   : > { %p540_p0 = pnand %p1023_p11, %p1022_p12 }
 0x160   : > { %720 = dma.done.wait (!%p540_p0), %s387_s20, 128  }
 0x161   : > { %722 = vsyncadd (!%p540_p0), %s387_s20, 4294967168  ;;  %s20_s17 = sadd.s32 1, %s745_s17   ;;  %s1024_s12 = smov %s729_s13 }
 0x162   : > { %p17_p5 = scmp.ge.s32.totalorder %s20_s17, 4   ;;  %s1025_s13 = smov %s733_s14 }
 0x163   : > { %s1026_s14 = smov %s880_s5  ;;  %s1027_s15 = smov %s741_s16 }
 0x164   : > { %s1028_s16 = smov %s1030_s28  ;;  %19 = sbr.rel (!%p17_p5) target bundleno = 7 (0x7), region = 97 }
 0x16b   :  { %392 = vsyncpa [#allocation4], 1 }
 0x16c   :  { %394 = vsyncpa [#allocation4 + $0x1], 1 }
 0x16d   :  { %395 = vsyncpa [#allocation7], 1 }
 0x16e   :  { %396 = vsyncpa [#allocation5], 1 }
 0x16f   :  { %398 = vsyncpa [#allocation5 + $0x1], 1 }

</bundles_post_ra>
